<compile_context>
chip_gen: v7x
topology: tpu7x:2x2x1
jax: 0.10.0
libtpu: 0.0.40
codegen_flags: <defaults>
</compile_context>

<pallas_src>
import functools

import jax
import jax.numpy as jnp
from jax.experimental import pallas as pl
from jax.experimental.pallas import tpu as pltpu

_XG_PAD = 16     # (x, grad) channels padded 2 -> 16 (one bf16 sublane tile)
_GATE_PAD = 8    # gate conv Cout padded 2 -> 8


@functools.lru_cache(maxsize=None)
def _roll_like_jnp():
    """Probe pltpu.roll's sign convention (cached).

    True  -> pltpu.roll(x, a, axis)[i] == x[(i - a) % n]   (same as jnp.roll)
    False -> pltpu.roll(x, a, axis)[i] == x[(i + a) % n]
    Safe to call from inside a jit trace (evaluated at compile time).
    """
    def probe(x_ref, o_ref):
        o_ref[...] = pltpu.roll(x_ref[...], 1, axis=1)

    with jax.ensure_compile_time_eval():
        x = jax.lax.broadcasted_iota(jnp.float32, (8, 128), 1)
        y = pl.pallas_call(
            probe, out_shape=jax.ShapeDtypeStruct((8, 128), jnp.float32))(x)
        return bool(y[0, 0] == 127.0)


def _im2col_store(patch_ref, row0, src, mask_ref, W, roll_like_jnp):
    """Write the 9-tap im2col of `src` ((C, N) f32) into bf16 scratch rows
    [row0, row0 + 9*C).  Row row0 + t*C + c holds channel c shifted by tap
    t = 3*ky + kx.  Shifts are XLU lane rotations over the packed lane axis;
    the (per-image) border masks zero both the image padding and any roll
    wrap-around (including across packed image boundaries)."""
    C, N = src.shape
    for t in range(9):
        dy, dx = t // 3 - 1, t % 3 - 1
        s = dy * W + dx                               # flat source offset
        if s == 0:
            rolled = src
        else:
            amt = (-s) % N if roll_like_jnp else s % N
            rolled = pltpu.roll(src, amt, axis=1)
        # f32 mask multiply (v5e-safe), single cast to bf16, straight into VMEM
        # scratch -- each tap is transient, no concat-then-cast.
        patch_ref[row0 + t * C: row0 + (t + 1) * C, :] = (
            rolled * mask_ref[t:t + 1, :]).astype(jnp.bfloat16)


def _rim_kernel(W, roll_like_jnp,
                xg_ref, h_ref, mask_ref,
                wg1_ref, bg1_ref, wg2_ref, bg2_ref,
                wc1_ref, bc1_ref, wc2_ref, bc2_ref,
                out_ref, patch_ref):
    f32 = jnp.float32
    HD = h_ref.shape[0]
    nh = 9 * HD

    # Patch scratch layout: rows [0, 9*HD)           = taps of h / reset*h / hidden
    #                       rows [9*HD, 9*(HD+16))   = taps of the (x, grad) image
    # The (x, grad) taps are written once and reused by both first-layer convs.
    _im2col_store(patch_ref, 0, h_ref[...], mask_ref, W, roll_like_jnp)
    _im2col_store(patch_ref, nh, xg_ref[...], mask_ref, W, roll_like_jnp)

    # ---- gate path: conv -> relu -> conv -> sigmoid ----
    # First conv = single K-concatenated matmul over [h-taps ; xg-taps].
    ghid = jnp.dot(wg1_ref[...], patch_ref[...], preferred_element_type=f32)
    ghid = jnp.maximum(ghid + bg1_ref[...], 0.0)                     # (HD, N)
    _im2col_store(patch_ref, 0, ghid, mask_ref, W, roll_like_jnp)
    gates = jax.nn.sigmoid(
        jnp.dot(wg2_ref[...], patch_ref[0:nh, :], preferred_element_type=f32)
        + bg2_ref[...])                                              # (8, N)
    update = gates[0:1, :]               # torch.chunk(2, dim=1): ch0 -> update
    reset = gates[1:2, :]                #                        ch1 -> reset

    # ---- candidate path: conv -> relu -> conv -> tanh ----
    _im2col_store(patch_ref, 0, reset * h_ref[...], mask_ref, W, roll_like_jnp)
    chid = jnp.dot(wc1_ref[...], patch_ref[...], preferred_element_type=f32)
    chid = jnp.maximum(chid + bc1_ref[...], 0.0)                     # (HD, N)
    _im2col_store(patch_ref, 0, chid, mask_ref, W, roll_like_jnp)
    cand = jnp.tanh(
        jnp.dot(wc2_ref[...], patch_ref[0:nh, :], preferred_element_type=f32)
        + bc2_ref[...])                                              # (HD, N)

    out_ref[...] = (1.0 - update) * h_ref[...] + update * cand


# ---------------------- wrapper-side layout plumbing ----------------------
def _omat(w):
    """OIHW (Cout, Cin, 3, 3) -> (Cout, 9*Cin) bf16, tap-major columns
    (column (3*ky + kx)*Cin + ci) matching the im2col patch row layout."""
    co, ci = w.shape[0], w.shape[1]
    return jnp.transpose(w, (0, 2, 3, 1)).reshape(co, 9 * ci).astype(jnp.bfloat16)


def _first_layer_mat(w):
    """(HD, 2+HD, 3, 3) -> (HD, 9*HD + 9*_XG_PAD) bf16 = [h-taps | (x,grad)-taps]."""
    w_h = _omat(w[:, 2:])                                            # (HD, 9*HD)
    w_xg = _omat(jnp.pad(w[:, :2],
                         ((0, 0), (0, _XG_PAD - 2), (0, 0), (0, 0))))  # (HD, 144)
    return jnp.concatenate([w_h, w_xg], axis=1)


def _build_masks(H, W, bt):
    """(16, bt*H*W) f32 border masks, one row per 3x3 tap (rows 9..15 are pad).

    Per-image coordinates (modulo H*W) so the masks also zero the lane-roll
    wrap-around across packed image boundaries."""
    HW = H * W
    p = jnp.arange(bt * HW, dtype=jnp.int32) % HW
    hpos, wpos = p // W, p % W
    rows = []
    for t in range(9):
        dy, dx = t // 3 - 1, t % 3 - 1
        rows.append((hpos + dy >= 0) & (hpos + dy < H) &
                    (wpos + dx >= 0) & (wpos + dx < W))
    m = jnp.stack(rows, axis=0).astype(jnp.float32)                  # (9, N)
    return jnp.pad(m, ((0, 16 - 9), (0, 0)))                         # (16, N)


def rim_cell_forward(x, grad, h, params, *, max_batch_tile=8):
    """x, grad: (B, 1, H, W); h: (B, HD, H, W)  -- NCHW / PyTorch weight layout."""
    B, HD, H, W = h.shape
    HW = H * W
    roll_like_jnp = _roll_like_jnp()

    # Batch lane-packing: largest divisor of B that is <= max_batch_tile images
    # per grid step; matmul N dim becomes bt*H*W lanes.
    bt = max(c for c in range(1, min(B, max_batch_tile) + 1) if B % c == 0)
    n_tiles = B // bt
    N = bt * HW
    # TODO(synk): on v7x prefer keeping >= 2 "parallel" grid steps (2 TensorCores)
    # when B allows; and for large H*W, additionally tile the spatial axis with
    # 1-row halos instead of keeping whole images per step in VMEM.

    # ---- weights / biases ----
    wg1 = _first_layer_mat(params['wg1'])
    wc1 = _first_layer_mat(params['wc1'])
    wg2 = _omat(jnp.pad(params['wg2'],
                        ((0, _GATE_PAD - 2), (0, 0), (0, 0), (0, 0))))
    wc2 = _omat(params['wc2'])
    bg1 = params['bg1'].reshape(HD, 1).astype(jnp.float32)
    bc1 = params['bc1'].reshape(HD, 1).astype(jnp.float32)
    bg2 = jnp.pad(params['bg2'], (0, _GATE_PAD - 2)).reshape(_GATE_PAD, 1)
    bg2 = bg2.astype(jnp.float32)
    bc2 = params['bc2'].reshape(HD, 1).astype(jnp.float32)
    masks = _build_masks(H, W, bt)                                   # (16, N)

    # ---- activations: channels in sublanes, batch packed into lanes ----
    xg = jnp.concatenate([x, grad], axis=1)                          # (B, 2, H, W)
    xg = jnp.pad(xg, ((0, 0), (0, _XG_PAD - 2), (0, 0), (0, 0)))
    xg = jnp.transpose(xg.reshape(B, _XG_PAD, HW), (1, 0, 2))
    xg = xg.reshape(_XG_PAD, B * HW).astype(jnp.float32)
    hp = jnp.transpose(h.reshape(B, HD, HW), (1, 0, 2))
    hp = hp.reshape(HD, B * HW).astype(jnp.float32)

    act = lambda c: pl.BlockSpec((c, N), lambda b: (0, b))
    whole = lambda a: pl.BlockSpec(a.shape, lambda b: (0, 0))
    weights = (masks, wg1, bg1, wg2, bg2, wc1, bc1, wc2, bc2)

    out = pl.pallas_call(
        functools.partial(_rim_kernel, W, roll_like_jnp),
        out_shape=jax.ShapeDtypeStruct((HD, B * HW), jnp.float32),
        grid=(n_tiles,),
        in_specs=[act(_XG_PAD), act(HD)] + [whole(a) for a in weights],
        out_specs=act(HD),
        scratch_shapes=[pltpu.VMEM((9 * (HD + _XG_PAD), N), jnp.bfloat16)],
        compiler_params=pltpu.CompilerParams(
            dimension_semantics=("parallel",)),
    )(xg, hp, *weights)

    out = jnp.transpose(out.reshape(HD, B, HW), (1, 0, 2)).reshape(B, HD, H, W)
    return out.astype(h.dtype)


# ---------------- pure-JAX reference (for correctness check) ----------------
def _conv_ref(a, w, b):
    # Same precision policy as the kernel: bf16 MXU inputs, f32 accumulation.
    y = jax.lax.conv_general_dilated(
        a.astype(jnp.bfloat16), w.astype(jnp.bfloat16),
        window_strides=(1, 1), padding='SAME',
        dimension_numbers=('NCHW', 'OIHW', 'NCHW'),
        preferred_element_type=jnp.float32)
    return y + b.reshape(1, -1, 1, 1).astype(jnp.float32)


def rim_cell_ref(x, grad, h, p):
    combined = jnp.concatenate([x, grad, h], axis=1)
    hid = jax.nn.relu(_conv_ref(combined, p['wg1'], p['bg1']))
    gates = jax.nn.sigmoid(_conv_ref(hid, p['wg2'], p['bg2']))
    update, reset = gates[:, 0:1], gates[:, 1:2]
    combined_reset = jnp.concatenate([x, grad, reset * h], axis=1)
    hid2 = jax.nn.relu(_conv_ref(combined_reset, p['wc1'], p['bc1']))
    cand = jnp.tanh(_conv_ref(hid2, p['wc2'], p['bc2']))
    return (1.0 - update) * h + update * cand


if __name__ == "__main__":
    B, HD, H, W = 2, 32, 16, 16
    CIN = 1 + 1 + HD

    key = jax.random.PRNGKey(0)
    ks = jax.random.split(key, 11)
    # PyTorch-layout parameters: OIHW conv weights, 1-D biases.
    params = {
        'wg1': 0.1 * jax.random.normal(ks[0], (HD, CIN, 3, 3), jnp.float32),
        'bg1': 0.01 * jax.random.normal(ks[1], (HD,), jnp.float32),
        'wg2': 0.1 * jax.random.normal(ks[2], (2, HD, 3, 3), jnp.float32),
        'bg2': 0.01 * jax.random.normal(ks[3], (2,), jnp.float32),
        'wc1': 0.1 * jax.random.normal(ks[4], (HD, CIN, 3, 3), jnp.float32),
        'bc1': 0.01 * jax.random.normal(ks[5], (HD,), jnp.float32),
        'wc2': 0.1 * jax.random.normal(ks[6], (HD, HD, 3, 3), jnp.float32),
        'bc2': 0.01 * jax.random.normal(ks[7], (HD,), jnp.float32),
    }
    x = jax.random.normal(ks[8], (B, 1, H, W), jnp.float32)
    grad = jax.random.normal(ks[9], (B, 1, H, W), jnp.float32)
    h0 = jax.random.normal(ks[10], (B, HD, H, W), jnp.float32)

    _roll_like_jnp()   # prewarm the cached roll-convention probe (outside jit)

    h_new = jax.block_until_ready(jax.jit(rim_cell_forward)(x, grad, h0, params))
    assert h_new.shape == (B, HD, H, W), h_new.shape

    ref = rim_cell_ref(x, grad, h0, params)
    err = jnp.abs(h_new - ref)
    max_err = float(jnp.max(err))
    mean_err = float(jnp.mean(err))
    # Kernel and reference both use bf16 MXU inputs with f32 accumulation; the
    # residual difference is accumulation-order / double-rounding noise only.
    assert max_err < 2e-2, f"max abs err {max_err}"
    assert mean_err < 2e-3, f"mean abs err {mean_err}"
    print("KERNEL_OK")
</pallas_src>

<mosaic_0001>
module attributes {stable_mosaic.version = 11 : i64} {
  func.func @probe(%arg0: memref<8x128xf32, #tpu.memory_space<vmem>>, %arg1: memref<8x128xf32, #tpu.memory_space<vmem>>) attributes {dimension_semantics = [], scalar_prefetch = 0 : i64, scratch_operands = 0 : i64, tpu.core_type = #tpu.core_type<tc>} {
    %c0 = arith.constant 0 : index
    %c0_0 = arith.constant 0 : index
    %0 = vector.load %arg0[%c0, %c0_0] : memref<8x128xf32, #tpu.memory_space<vmem>>, vector<8x128xf32>
    %c1_i32 = arith.constant 1 : i32
    %1 = tpu.dynamic_rotate %0 by %c1_i32 dim 1 : vector<8x128xf32>, i32 -> vector<8x128xf32>
    %c0_1 = arith.constant 0 : index
    %c0_2 = arith.constant 0 : index
    %2 = vector.load %arg1[%c0_1, %c0_2] : memref<8x128xf32, #tpu.memory_space<vmem>>, vector<8x128xf32>
    tpu.vector_store %arg1[%c0_1, %c0_2], %1 {strides = array<i32>} : memref<8x128xf32, #tpu.memory_space<vmem>>, vector<8x128xf32>,
    return
  }
}

</mosaic_0001>

<bundles_post_ra>
// kernel: tpu_custom_call.1
= control target key start
LH: loop header
LB: loop body
LE: loop exit
PB: predicated region body
PF: predicated region fallthrough
CT: control target
= control target key end

     0   :  { %6 = vsyncpa [#allocation3], 0  ;;  %s128_s0 = inlined_call_operand.hbm [shape: f32[8,128], index: 0, kind: input, shape index: {}]   ;;  %s129_s1 = inlined_call_operand.hbm [shape: f32[8,128], index: 1, kind: output, shape index: {}]  }
   0x1   :  { %7 = vsyncpa [#allocation4], 0  ;;  %s91_s6 = smov [#allocation2]   ;;  %s43_s10 = scalar_lea.hbm %s128_s0, 128 }
   0x2   :  { %s14_s7 = sshll.u32 %s91_s6, 4  ;;  %p44_p0 = scmp.ne.s32.totalorder %s128_s0, %s43_s10  ;;  %s15_s7 = int_to_ptr.vmem [resolvable:$true] %s14_s7 }
   0x3   :  { %p47_p1 = scmp.lt.u32.totalorder %s43_s10, %s128_s0 }
   0x5   :  { %p49_p2 = pnand %p47_p1, %p44_p0 }
   0x7   :  { %52 = shalt.err (!%p49_p2)
}
   0x8   :  { %s53_s15 = scalar_lea.vmem %s15_s7, 128  ;;  %p58_p4 = scmp.lt.s32.totalorder %s15_s7, %s15_s7 }
   0x9   :  { %p54_p3 = scmp.ne.s32.totalorder %s15_s7, %s53_s15  ;;  %p59_p5 = scmp.lt.s32.totalorder %s53_s15, %s53_s15 }
   0xb   :  { %p60_p6 = por %p59_p5, %p58_p4 }
   0xd   :  { %p61_p7 = pnand %p60_p6, %p54_p3 }
   0xf   :  { %64 = shalt.err (!%p61_p7)
}
  0x10   :  { %17 = dma.hbm_to_vmem [thread:$0]  %s128_s0, 128, %s15_s7, [#allocation3]  }
  0x11   :  { %87 = dma.done.wait [#allocation3], 128  }
  0x12   :  { %88 = vsyncadd [#allocation3], 4294967168  ;;  %v21_v0 = vld [vmem:[#allocation2] sm:$0xff]  ;;  %s92_s18 = smov 1   ;;  %s93_s19 = smov [#allocation5]  }
  0x13   :  { %22 = vrot.lane.b32.xlu0 %v21_v0, %s92_s18  ;;  %s31_s20 = sshll.u32 %s93_s19, 4  ;;  %s32_s20 = int_to_ptr.vmem [resolvable:$true] %s31_s20 }
  0x14   :  { %s65_s21 = scalar_lea.vmem %s32_s20, 128  ;;  %p70_p9 = scmp.lt.s32.totalorder %s32_s20, %s32_s20 }
  0x15   :  { %p66_p8 = scmp.ne.s32.totalorder %s32_s20, %s65_s21  ;;  %p71_p10 = scmp.lt.s32.totalorder %s65_s21, %s65_s21 }
  0x17   :  { %p72_p11 = por %p71_p10, %p70_p9 }
  0x19   :  { %p73_p12 = pnand %p72_p11, %p66_p8 }
  0x85   :  { %v23_v1 = vpop.permute.xlu0 %22 }
  0x86   :  { %24 = vst [vmem:[#allocation5] sm:$0xff] %v23_v1 }
  0x87   :  { %76 = shalt.err (!%p73_p12)
}
  0x88   :  { %s77_s0 = scalar_lea.hbm %s129_s1, 128 }
  0x89   :  { %p78_p13 = scmp.ne.s32.totalorder %s129_s1, %s77_s0  ;;  %p81_p0 = scmp.lt.u32.totalorder %s77_s0, %s129_s1 }
  0x8b   :  { %p83_p1 = pnand %p81_p0, %p78_p13 }
  0x8d   :  { %86 = shalt.err (!%p83_p1)
}
  0x8e   :  { %34 = dma.vmem_to_hbm [thread:$0]  %s32_s20, 128, %s129_s1, [#allocation4]  }
  0x8f   :  { %89 = dma.done.wait [#allocation4], 128  }
  0x90   :  { %90 = vsyncadd [#allocation4], 4294967168 }
  0x91   :  { %38 = vsyncpa [#allocation3], 1 }
  0x92   :  { %39 = vsyncpa [#allocation4], 1 }

</bundles_post_ra>
